<compile_context>
chip_gen: v5e
topology: v5e:2x2
jax: 0.10.0
libtpu: 0.0.40
codegen_flags: <defaults>
</compile_context>

<pallas_src>
import functools

import jax
import jax.numpy as jnp
from jax.experimental import pallas as pl
from jax.experimental.pallas import tpu as pltpu


def _round_up(n: int, m: int) -> int:
    return ((n + m - 1) // m) * m


def _choose_tb(B: int, cap: int = 1024) -> int:
    """Batch tile: multiple of 16 (bf16 pack), ideally 256 (MXU M-pass).

    Large batches are split into >= 2 tiles so the 'parallel' grid axis can
    shard across v7x's two TensorCores (neutral on single-TC v5e/v6e)."""
    b = _round_up(B, 16)
    if b <= 256:
        return b
    tb = min(cap, _round_up(b, 256))
    if tb >= b:  # would be a single big tile -> split in two (v7x megacore)
        tb = _round_up((b + 1) // 2, 256)
    return min(tb, cap)


def digitnet_kernel(x_ref, w1_ref, b1_ref, w2_ref, b2_ref, w3_ref, b3_ref, o_ref):
    # x arrives as f32; cast to bf16 here (free under MXU slack) for the MXU.
    x = x_ref[...].astype(jnp.bfloat16)

    # Layer 1: (TB, D) @ (D, 512) -> f32 acc, +bias, ReLU, back to bf16.
    h1 = jnp.dot(x, w1_ref[...], preferred_element_type=jnp.float32)
    h1 = jnp.maximum(h1 + b1_ref[...], 0.0).astype(jnp.bfloat16)

    # Layer 2: (TB, 512) @ (512, 128)
    h2 = jnp.dot(h1, w2_ref[...], preferred_element_type=jnp.float32)
    h2 = jnp.maximum(h2 + b2_ref[...], 0.0).astype(jnp.bfloat16)

    # Layer 3: (TB, 128) @ (128, C_pad); pad columns carry a -1e30 bias so they
    # contribute exactly 0 to the softmax.
    logits = jnp.dot(h2, w3_ref[...], preferred_element_type=jnp.float32) + b3_ref[...]

    # Numerically-stable softmax over the lane-dense 128-wide class axis.
    m = jnp.max(logits, axis=-1, keepdims=True)
    e = jnp.exp(logits - m)
    s = jnp.sum(e, axis=-1, keepdims=True)
    o_ref[...] = (e / s).astype(o_ref.dtype)  # exact divide: rows sum to 1


def prepare_params(params):
    """One-time weight prep: bf16 cast for MXU inputs, f32 biases, class dim
    padded to a 128-lane multiple (zero weight cols, -1e30 pad bias)."""
    w1, b1, w2, b2, w3, b3 = params
    C = w3.shape[1]
    C_pad = _round_up(max(C, 128), 128)

    w1b = w1.astype(jnp.bfloat16)
    w2b = w2.astype(jnp.bfloat16)
    b1f = b1.reshape(1, -1).astype(jnp.float32)
    b2f = b2.reshape(1, -1).astype(jnp.float32)
    w3p = jnp.zeros((w3.shape[0], C_pad), jnp.bfloat16).at[:, :C].set(
        w3.astype(jnp.bfloat16))
    b3p = jnp.full((1, C_pad), -1e30, jnp.float32).at[:, :C].set(
        b3.reshape(-1).astype(jnp.float32))
    return (w1b, b1f, w2b, b2f, w3p, b3p)


@functools.partial(jax.jit, static_argnames=("num_classes", "tb"))
def digitnet_forward(x, prepped, *, num_classes, tb=None):
    w1b, b1f, w2b, b2f, w3p, b3p = prepped
    B, D = x.shape
    H1 = w1b.shape[1]
    H2 = w2b.shape[1]
    C_pad = w3p.shape[1]

    if tb is None:
        tb = _choose_tb(B)
    B_pad = _round_up(B, tb)

    xf = x.astype(jnp.float32)
    if B_pad != B:
        xf = jnp.pad(xf, ((0, B_pad - B), (0, 0)))
    n_tiles = B_pad // tb

    cost = pl.CostEstimate(
        flops=2 * B_pad * (D * H1 + H1 * H2 + H2 * C_pad),
        transcendentals=B_pad * C_pad,  # exp per padded class lane
        bytes_accessed=(xf.size * 4 + w1b.size * 2 + w2b.size * 2 + w3p.size * 2
                        + (b1f.size + b2f.size + b3p.size) * 4
                        + B_pad * C_pad * 4),
    )

    out = pl.pallas_call(
        digitnet_kernel,
        out_shape=jax.ShapeDtypeStruct((B_pad, C_pad), jnp.float32),
        grid=(n_tiles,),
        in_specs=[
            pl.BlockSpec((tb, D), lambda i: (i, 0)),       # x: batch-tiled, f32
            pl.BlockSpec(w1b.shape, lambda i: (0, 0)),     # weights/biases stay
            pl.BlockSpec(b1f.shape, lambda i: (0, 0)),     # VMEM-resident
            pl.BlockSpec(w2b.shape, lambda i: (0, 0)),
            pl.BlockSpec(b2f.shape, lambda i: (0, 0)),
            pl.BlockSpec(w3p.shape, lambda i: (0, 0)),
            pl.BlockSpec(b3p.shape, lambda i: (0, 0)),
        ],
        out_specs=pl.BlockSpec((tb, C_pad), lambda i: (i, 0)),
        compiler_params=pltpu.CompilerParams(
            dimension_semantics=("parallel",)),
        cost_estimate=cost,
    )(xf, w1b, b1f, w2b, b2f, w3p, b3p)

    # Under jit this slice fuses with the consumer instead of being a separate
    # lane-sparse HBM pass.
    return out[:B, :num_classes]


def init_params(key, input_dimensions, num_classes):
    """Deterministic synthetic init (PyTorch-like uniform(-1/sqrt(fan_in), +))."""
    dims = [(input_dimensions, 512), (512, 128), (128, num_classes)]
    params = []
    for i, (fan_in, fan_out) in enumerate(dims):
        kw, kb, key = jax.random.split(jax.random.fold_in(key, i), 3)
        bound = 1.0 / jnp.sqrt(float(fan_in))
        w = jax.random.uniform(kw, (fan_in, fan_out), jnp.float32, -bound, bound)
        b = jax.random.uniform(kb, (1, fan_out), jnp.float32, -bound, bound)
        params += [w, b]
    return tuple(params)


def reference_forward(x, params):
    """Pure-JAX reference at the same (bf16-in / f32-acc) precision as the kernel."""
    w1, b1, w2, b2, w3, b3 = params
    h = jnp.dot(x.astype(jnp.bfloat16), w1.astype(jnp.bfloat16),
                preferred_element_type=jnp.float32) + b1
    h = jnp.maximum(h, 0.0).astype(jnp.bfloat16)
    h = jnp.dot(h, w2.astype(jnp.bfloat16),
                preferred_element_type=jnp.float32) + b2
    h = jnp.maximum(h, 0.0).astype(jnp.bfloat16)
    logits = jnp.dot(h, w3.astype(jnp.bfloat16),
                     preferred_element_type=jnp.float32) + b3
    return jax.nn.softmax(logits, axis=-1)


if __name__ == "__main__":
    batch = 8
    input_dimensions = 256
    num_classes = 10

    key = jax.random.PRNGKey(0)
    kx, kp = jax.random.split(key)
    x = jax.random.normal(kx, (batch, input_dimensions), jnp.float32)
    params = init_params(kp, input_dimensions, num_classes)

    prepped = prepare_params(params)
    out = jax.block_until_ready(
        digitnet_forward(x, prepped, num_classes=num_classes))
    ref = reference_forward(x, params)

    assert out.shape == (batch, num_classes)
    assert jnp.allclose(out, ref, atol=2e-3, rtol=2e-3), "mismatch vs pure-JAX reference"
    assert jnp.allclose(out.sum(axis=-1), 1.0, atol=2e-3), "softmax rows must sum to 1"

    print("KERNEL_OK")
</pallas_src>

<mosaic_0001>
module attributes {stable_mosaic.version = 11 : i64} {
  func.func @digitnet_kernel(%arg0: i32, %arg1: memref<16x256xf32, #tpu.memory_space<vmem>>, %arg2: memref<256x512xbf16, #tpu.memory_space<vmem>>, %arg3: memref<1x512xf32, #tpu.memory_space<vmem>>, %arg4: memref<512x128xbf16, #tpu.memory_space<vmem>>, %arg5: memref<1x128xf32, #tpu.memory_space<vmem>>, %arg6: memref<128x128xbf16, #tpu.memory_space<vmem>>, %arg7: memref<1x128xf32, #tpu.memory_space<vmem>>, %arg8: memref<16x128xf32, #tpu.memory_space<vmem>>) attributes {dimension_semantics = [#tpu.dimension_semantics<parallel>], iteration_bounds = array<i64: 1>, scalar_prefetch = 0 : i64, scratch_operands = 0 : i64, tpu.core_type = #tpu.core_type<tc>, window_params = [{transform_indices = @transform_0, window_bounds = array<i64: 16, 256>}, {pipeline_mode = #tpu.pipeline_mode<synchronous>, transform_indices = @transform_1, window_bounds = array<i64: 256, 512>}, {pipeline_mode = #tpu.pipeline_mode<synchronous>, transform_indices = @transform_2, window_bounds = array<i64: 1, 512>}, {pipeline_mode = #tpu.pipeline_mode<synchronous>, transform_indices = @transform_3, window_bounds = array<i64: 512, 128>}, {pipeline_mode = #tpu.pipeline_mode<synchronous>, transform_indices = @transform_4, window_bounds = array<i64: 1, 128>}, {pipeline_mode = #tpu.pipeline_mode<synchronous>, transform_indices = @transform_5, window_bounds = array<i64: 128, 128>}, {pipeline_mode = #tpu.pipeline_mode<synchronous>, transform_indices = @transform_6, window_bounds = array<i64: 1, 128>}, {transform_indices = @transform_7, window_bounds = array<i64: 16, 128>}]} {
    %c0 = arith.constant 0 : index
    %c0_0 = arith.constant 0 : index
    %0 = vector.load %arg1[%c0, %c0_0] : memref<16x256xf32, #tpu.memory_space<vmem>>, vector<16x256xf32>
    %1 = arith.truncf %0 : vector<16x256xf32> to vector<16x256xbf16>
    %c0_1 = arith.constant 0 : index
    %c0_2 = arith.constant 0 : index
    %2 = vector.load %arg2[%c0_1, %c0_2] : memref<256x512xbf16, #tpu.memory_space<vmem>>, vector<256x512xbf16>
    %cst = arith.constant dense<0.000000e+00> : vector<16x512xf32>
    %3 = tpu.matmul %1, %2, %cst {dimension_numbers = #tpu.dot_dimension_numbers<[1], [0], [0], [1], [0, 0, 1, 1], [], []>} : vector<16x256xbf16>, vector<256x512xbf16>, vector<16x512xf32> -> vector<16x512xf32>
    %c0_3 = arith.constant 0 : index
    %c0_4 = arith.constant 0 : index
    %4 = vector.load %arg3[%c0_3, %c0_4] : memref<1x512xf32, #tpu.memory_space<vmem>>, vector<1x512xf32>
    %5 = vector.broadcast %4 : vector<1x512xf32> to vector<16x512xf32>
    %6 = arith.addf %3, %5 : vector<16x512xf32>
    %cst_5 = arith.constant 0.000000e+00 : f32
    %7 = vector.broadcast %cst_5 : f32 to vector<16x512xf32>
    %8 = arith.maximumf %6, %7 : vector<16x512xf32>
    %9 = arith.truncf %8 : vector<16x512xf32> to vector<16x512xbf16>
    %c0_6 = arith.constant 0 : index
    %c0_7 = arith.constant 0 : index
    %10 = vector.load %arg4[%c0_6, %c0_7] : memref<512x128xbf16, #tpu.memory_space<vmem>>, vector<512x128xbf16>
    %cst_8 = arith.constant dense<0.000000e+00> : vector<16x128xf32>
    %11 = tpu.matmul %9, %10, %cst_8 {dimension_numbers = #tpu.dot_dimension_numbers<[1], [0], [0], [1], [0, 0, 1, 1], [], []>} : vector<16x512xbf16>, vector<512x128xbf16>, vector<16x128xf32> -> vector<16x128xf32>
    %c0_9 = arith.constant 0 : index
    %c0_10 = arith.constant 0 : index
    %12 = vector.load %arg5[%c0_9, %c0_10] : memref<1x128xf32, #tpu.memory_space<vmem>>, vector<1x128xf32>
    %13 = vector.broadcast %12 : vector<1x128xf32> to vector<16x128xf32>
    %14 = arith.addf %11, %13 : vector<16x128xf32>
    %cst_11 = arith.constant 0.000000e+00 : f32
    %15 = vector.broadcast %cst_11 : f32 to vector<16x128xf32>
    %16 = arith.maximumf %14, %15 : vector<16x128xf32>
    %17 = arith.truncf %16 : vector<16x128xf32> to vector<16x128xbf16>
    %c0_12 = arith.constant 0 : index
    %c0_13 = arith.constant 0 : index
    %18 = vector.load %arg6[%c0_12, %c0_13] : memref<128x128xbf16, #tpu.memory_space<vmem>>, vector<128x128xbf16>
    %cst_14 = arith.constant dense<0.000000e+00> : vector<16x128xf32>
    %19 = tpu.matmul %17, %18, %cst_14 {dimension_numbers = #tpu.dot_dimension_numbers<[1], [0], [0], [1], [0, 0, 1, 1], [], []>} : vector<16x128xbf16>, vector<128x128xbf16>, vector<16x128xf32> -> vector<16x128xf32>
    %c0_15 = arith.constant 0 : index
    %c0_16 = arith.constant 0 : index
    %20 = vector.load %arg7[%c0_15, %c0_16] : memref<1x128xf32, #tpu.memory_space<vmem>>, vector<1x128xf32>
    %21 = vector.broadcast %20 : vector<1x128xf32> to vector<16x128xf32>
    %22 = arith.addf %19, %21 : vector<16x128xf32>
    %cst_17 = arith.constant dense<0xFF800000> : vector<16xf32>
    %23 = vector.multi_reduction <maximumf>, %22, %cst_17 [1] : vector<16x128xf32> to vector<16xf32>
    %24 = vector.shape_cast %23 : vector<16xf32> to vector<16x1xf32>
    %25 = vector.broadcast %24 : vector<16x1xf32> to vector<16x128xf32>
    %26 = arith.subf %22, %25 : vector<16x128xf32>
    %27 = math.exp %26 : vector<16x128xf32>
    %cst_18 = arith.constant dense<0.000000e+00> : vector<16xf32>
    %28 = vector.multi_reduction <add>, %27, %cst_18 [1] : vector<16x128xf32> to vector<16xf32>
    %29 = vector.shape_cast %28 : vector<16xf32> to vector<16x1xf32>
    %30 = vector.broadcast %29 : vector<16x1xf32> to vector<16x128xf32>
    %31 = arith.divf %27, %30 : vector<16x128xf32>
    %c0_19 = arith.constant 0 : index
    %c0_20 = arith.constant 0 : index
    %32 = vector.load %arg8[%c0_19, %c0_20] : memref<16x128xf32, #tpu.memory_space<vmem>>, vector<16x128xf32>
    tpu.vector_store %arg8[%c0_19, %c0_20], %31 {strides = array<i32>} : memref<16x128xf32, #tpu.memory_space<vmem>>, vector<16x128xf32>,
    return
  }
  func.func @transform_0(%arg0: i32) -> (i32, i32) {
    %c0_i32 = arith.constant 0 : i32
    %c0_i32_0 = arith.constant 0 : i32
    return %arg0, %c0_i32 : i32, i32
  }
  func.func @transform_1(%arg0: i32) -> (i32, i32) {
    %c0_i32 = arith.constant 0 : i32
    %c0_i32_0 = arith.constant 0 : i32
    %c0_i32_1 = arith.constant 0 : i32
    return %c0_i32, %c0_i32_0 : i32, i32
  }
  func.func @transform_2(%arg0: i32) -> (i32, i32) {
    %c0_i32 = arith.constant 0 : i32
    %c0_i32_0 = arith.constant 0 : i32
    %c0_i32_1 = arith.constant 0 : i32
    return %c0_i32, %c0_i32_0 : i32, i32
  }
  func.func @transform_3(%arg0: i32) -> (i32, i32) {
    %c0_i32 = arith.constant 0 : i32
    %c0_i32_0 = arith.constant 0 : i32
    %c0_i32_1 = arith.constant 0 : i32
    return %c0_i32, %c0_i32_0 : i32, i32
  }
  func.func @transform_4(%arg0: i32) -> (i32, i32) {
    %c0_i32 = arith.constant 0 : i32
    %c0_i32_0 = arith.constant 0 : i32
    %c0_i32_1 = arith.constant 0 : i32
    return %c0_i32, %c0_i32_0 : i32, i32
  }
  func.func @transform_5(%arg0: i32) -> (i32, i32) {
    %c0_i32 = arith.constant 0 : i32
    %c0_i32_0 = arith.constant 0 : i32
    %c0_i32_1 = arith.constant 0 : i32
    return %c0_i32, %c0_i32_0 : i32, i32
  }
  func.func @transform_6(%arg0: i32) -> (i32, i32) {
    %c0_i32 = arith.constant 0 : i32
    %c0_i32_0 = arith.constant 0 : i32
    %c0_i32_1 = arith.constant 0 : i32
    return %c0_i32, %c0_i32_0 : i32, i32
  }
  func.func @transform_7(%arg0: i32) -> (i32, i32) {
    %c0_i32 = arith.constant 0 : i32
    %c0_i32_0 = arith.constant 0 : i32
    return %arg0, %c0_i32 : i32, i32
  }
}

</mosaic_0001>

<bundles_post_ra>
// kernel: digitnet_forward.1
= control target key start
LH: loop header
LB: loop body
LE: loop exit
PB: predicated region body
PF: predicated region fallthrough
CT: control target
= control target key end

     0   :  { %12 = vsyncpa [#allocation3], 0  ;;  %s1764_s0 = inlined_call_operand.vmem [shape: f32[16,256], index: 0, kind: input, shape index: {}]   ;;  %s1765_s1 = inlined_call_operand.hbm [shape: bf16[256,512], index: 1, kind: input, shape index: {}]   ;;  %s1766_s2 = inlined_call_operand.vmem [shape: f32[1,512], index: 2, kind: input, shape index: {}]   ;;  %s1767_s3 = inlined_call_operand.hbm [shape: bf16[512,128], index: 3, kind: input, shape index: {}]   ;;  %s1768_s4 = inlined_call_operand.vmem [shape: f32[1,128], index: 4, kind: input, shape index: {}]   ;;  %s1769_s5 = inlined_call_operand.hbm [shape: bf16[128,128], index: 5, kind: input, shape index: {}]   ;;  %s1770_s6 = inlined_call_operand.vmem [shape: f32[1,128], index: 6, kind: input, shape index: {}]   ;;  %s1771_s7 = inlined_call_operand.vmem [shape: f32[16,128], index: 7, kind: output, shape index: {}]  }
   0x1   :  { %13 = vsyncpa [#allocation5], 0  ;;  %s35_s26 = sshll.u32 %s1767_s3, 4  ;;  %s1663_s27 = smov [#allocation4]   ;;  %s36_s26 = int_to_ptr.hbm [resolvable:$true] %s35_s26 }
   0x2   :  { %s37_s28 = sshll.u32 %s1663_s27, 4  ;;  %s20_s8 = sshll.u32 %s1765_s1, 4  ;;  %s38_s28 = int_to_ptr.vmem [resolvable:$true] %s37_s28  ;;  %s21_s8 = int_to_ptr.hbm [resolvable:$true] %s20_s8 }
   0x3   :  { %s1664_s9 = smov 64   ;;  %s1665_s10 = smov 4  }
   0x4   :  { %43 = dma.hbm_to_vmem [thread:$0]  %s36_s26, 4096, %s38_s28, [#allocation5], %s1664_s9, %s1664_s9, %s1665_s10  }
   0x5   :  { %s1666_s11 = smov [#allocation2]   ;;  %s1667_s13 = smov 256  }
   0x6   :  { %s22_s12 = sshll.u32 %s1666_s11, 4  ;;  %s1668_s14 = smov 16   ;;  %s23_s12 = int_to_ptr.vmem [resolvable:$true] %s22_s12 }
   0x7   :  { %28 = dma.hbm_to_vmem [thread:$0]  %s21_s8, 8192, %s23_s12, [#allocation3], %s1667_s13, %s1667_s13, %s1668_s14  }
   0x8   :  { %s50_s16 = sshll.u32 %s1769_s5, 4  ;;  %s1669_s17 = smov [#allocation6]   ;;  %s51_s16 = int_to_ptr.hbm [resolvable:$true] %s50_s16 }
   0x9   :  { %s52_s18 = sshll.u32 %s1669_s17, 4  ;;  %s53_s18 = int_to_ptr.vmem [resolvable:$true] %s52_s18 }
   0xa   :  { %58 = dma.hbm_to_vmem [thread:$0]  %s51_s16, 1024, %s53_s18, [#allocation5], %s1664_s9, %s1664_s9, %s1665_s10  }
   0xb   :  { %1659 = dma.done.wait [#allocation3], 8192  }
   0xc   :  { %1660 = vsyncadd [#allocation3], 4294959104 }
   0xd   :  { %1661 = dma.done.wait [#allocation5], 5120  }
   0xe   :  { %1662 = vsyncadd [#allocation5], 4294962176  ;;  %v1164_v0 = vld [vmem:[#allocation2 + $0xe0] sm:$0xf]  ;;  %v1496_v1 = vld [vmem:[#allocation2 + $0xec] sm:$0xf0] }
   0xf   :  { %v1292_v2 = vld [vmem:[#allocation2 + $0x1e0] sm:$0xf]  ;;  %v1165_v3 = vor.u32 %v1496_v1, %v1164_v0  ;;  %v1528_v4 = vld [vmem:[#allocation2 + $0x1ec] sm:$0xf0]  ;;  %v1494_v5 = vld [vmem:[#allocation2 + $0xe4] sm:$0xf] }
  0x10   :  { %v1166_v6 = vld [vmem:[#allocation2 + $0xf0] sm:$0xf0]  ;;  %v1293_v7 = vor.u32 %v1528_v4, %v1292_v2  ;;  %v1526_v9 = vld [vmem:[#allocation2 + $0x1e4] sm:$0xf]  ;;  %v1148_v11 = vld [vmem:[#allocation2 + $0xc0] sm:$0xf] }
  0x11   :  { %v1169_v8 = vor.u32 %v1494_v5, %v1166_v6  ;;  %v1294_v10 = vld [vmem:[#allocation2 + $0x1f0] sm:$0xf0]  ;;  %473 = vmatpush.bf16.msra.mxu0 %v1165_v3  ;;  %v1492_v13 = vld [vmem:[#allocation2 + $0xcc] sm:$0xf0]  ;;  %v1276_v14 = vld [vmem:[#allocation2 + $0x1c0] sm:$0xf] }
  0x12   :  { %v1297_v12 = vor.u32 %v1526_v9, %v1294_v10  ;;  %v1524_v15 = vld [vmem:[#allocation2 + $0x1cc] sm:$0xf0]  ;;  %487 = vmatpush.bf16.msra.mxu1 %v1293_v7  ;;  %v1149_v16 = vor.u32 %v1492_v13, %v1148_v11  ;;  %v1490_v18 = vld [vmem:[#allocation2 + $0xc4] sm:$0xf]  ;;  %v1150_v19 = vld [vmem:[#allocation2 + $0xd0] sm:$0xf0] }
  0x13   :  { %501 = vmatpush.bf16.msra.mxu2 %v1169_v8  ;;  %v1277_v17 = vor.u32 %v1524_v15, %v1276_v14  ;;  %v1522_v20 = vld [vmem:[#allocation2 + $0x1c4] sm:$0xf]  ;;  %v1153_v21 = vor.u32 %v1490_v18, %v1150_v19  ;;  %v1278_v22 = vld [vmem:[#allocation2 + $0x1d0] sm:$0xf0]  ;;  %v1132_v23 = vld [vmem:[#allocation2 + $0xa0] sm:$0xf] }
  0x14   :  { %515 = vmatpush.bf16.msra.mxu3 %v1297_v12  ;;  %v1488_v24 = vld [vmem:[#allocation2 + $0xac] sm:$0xf0]  ;;  %v1281_v25 = vor.u32 %v1522_v20, %v1278_v22  ;;  %v1260_v26 = vld [vmem:[#allocation2 + $0x1a0] sm:$0xf]  ;;  %v1486_v28 = vld [vmem:[#allocation2 + $0xa4] sm:$0xf] }
  0x15   :  { %v1520_v27 = vld [vmem:[#allocation2 + $0x1ac] sm:$0xf0]  ;;  %474 = vmatpush.bf16.msra.mxu0 %v1149_v16  ;;  %v1133_v29 = vor.u32 %v1488_v24, %v1132_v23  ;;  %v1134_v30 = vld [vmem:[#allocation2 + $0xb0] sm:$0xf0]  ;;  %v1518_v31 = vld [vmem:[#allocation2 + $0x1a4] sm:$0xf] }
  0x16   :  { %v1262_v32 = vld [vmem:[#allocation2 + $0x1b0] sm:$0xf0]  ;;  %488 = vmatpush.bf16.msra.mxu1 %v1277_v17  ;;  %v1261_v33 = vor.u32 %v1520_v27, %v1260_v26  ;;  %v1137_v34 = vor.u32 %v1486_v28, %v1134_v30  ;;  %v1116_v35 = vld [vmem:[#allocation2 + $0x80] sm:$0xf]  ;;  %v1484_v36 = vld [vmem:[#allocation2 + $0x8c] sm:$0xf0] }
  0x17   :  { %502 = vmatpush.bf16.msra.mxu2 %v1153_v21  ;;  %v1244_v37 = vld [vmem:[#allocation2 + $0x180] sm:$0xf]  ;;  %v1265_v38 = vor.u32 %v1518_v31, %v1262_v32  ;;  %v1516_v39 = vld [vmem:[#allocation2 + $0x18c] sm:$0xf0]  ;;  %v1482_v40 = vld [vmem:[#allocation2 + $0x84] sm:$0xf]  ;;  %v1117_v44 = vor.u32 %v1484_v36, %v1116_v35 }
  0x18   :  { %516 = vmatpush.bf16.msra.mxu3 %v1281_v25  ;;  %v1118_v41 = vld [vmem:[#allocation2 + $0x90] sm:$0xf0]  ;;  %v1514_v42 = vld [vmem:[#allocation2 + $0x184] sm:$0xf]  ;;  %v1245_v45 = vor.u32 %v1516_v39, %v1244_v37  ;;  %v1100_v47 = vld [vmem:[#allocation2 + $0x60] sm:$0xf] }
  0x19   :  { %v1246_v43 = vld [vmem:[#allocation2 + $0x190] sm:$0xf0]  ;;  %475 = vmatpush.bf16.msra.mxu0 %v1133_v29  ;;  %v1121_v46 = vor.u32 %v1482_v40, %v1118_v41  ;;  %v1480_v48 = vld [vmem:[#allocation2 + $0x6c] sm:$0xf0]  ;;  %v1228_v49 = vld [vmem:[#allocation2 + $0x160] sm:$0xf] }
  0x1a   :  { %489 = vmatpush.bf16.msra.mxu1 %v1261_v33  ;;  %v1249_v50 = vor.u32 %v1514_v42, %v1246_v43  ;;  %v1512_v51 = vld [vmem:[#allocation2 + $0x16c] sm:$0xf0]  ;;  %v1478_v52 = vld [vmem:[#allocation2 + $0x64] sm:$0xf]  ;;  %v1102_v53 = vld [vmem:[#allocation2 + $0x70] sm:$0xf0]  ;;  %v1101_v56 = vor.u32 %v1480_v48, %v1100_v47 }
  0x1b   :  { %503 = vmatpush.bf16.msra.mxu2 %v1137_v34  ;;  %v1510_v54 = vld [vmem:[#allocation2 + $0x164] sm:$0xf]  ;;  %v1230_v55 = vld [vmem:[#allocation2 + $0x170] sm:$0xf0]  ;;  %v1229_v57 = vor.u32 %v1512_v51, %v1228_v49  ;;  %v1105_v58 = vor.u32 %v1478_v52, %v1102_v53  ;;  %v1084_v59 = vld [vmem:[#allocation2 + $0x40] sm:$0xf] }
  0x1c   :  { %517 = vmatpush.bf16.msra.mxu3 %v1265_v38  ;;  %v1476_v60 = vld [vmem:[#allocation2 + $0x4c] sm:$0xf0]  ;;  %v1212_v61 = vld [vmem:[#allocation2 + $0x140] sm:$0xf]  ;;  %v1233_v62 = vor.u32 %v1510_v54, %v1230_v55  ;;  %v1474_v0 = vld [vmem:[#allocation2 + $0x44] sm:$0xf] }
  0x1d   :  { %476 = vmatpush.bf16.msra.mxu0 %v1117_v44  ;;  %v1508_v63 = vld [vmem:[#allocation2 + $0x14c] sm:$0xf0]  ;;  %v1086_v1 = vld [vmem:[#allocation2 + $0x50] sm:$0xf0]  ;;  %v1506_v2 = vld [vmem:[#allocation2 + $0x144] sm:$0xf]  ;;  %v1085_v4 = vor.u32 %v1476_v60, %v1084_v59 }
  0x1e   :  { %490 = vmatpush.bf16.msra.mxu1 %v1245_v45  ;;  %v1214_v3 = vld [vmem:[#allocation2 + $0x150] sm:$0xf0]  ;;  %v1213_v5 = vor.u32 %v1508_v63, %v1212_v61  ;;  %v1089_v6 = vor.u32 %v1474_v0, %v1086_v1  ;;  %v1068_v7 = vld [vmem:[#allocation2 + $0x20] sm:$0xf]  ;;  %v1472_v8 = vld [vmem:[#allocation2 + $0x2c] sm:$0xf0] }
  0x1f   :  { %504 = vmatpush.bf16.msra.mxu2 %v1121_v46  ;;  %v1196_v9 = vld [vmem:[#allocation2 + $0x120] sm:$0xf]  ;;  %v1217_v10 = vor.u32 %v1506_v2, %v1214_v3  ;;  %v1504_v11 = vld [vmem:[#allocation2 + $0x12c] sm:$0xf0]  ;;  %v1470_v12 = vld [vmem:[#allocation2 + $0x24] sm:$0xf]  ;;  %v1069_v16 = vor.u32 %v1472_v8, %v1068_v7 }
  0x20   :  { %518 = vmatpush.bf16.msra.mxu3 %v1249_v50  ;;  %v1070_v13 = vld [vmem:[#allocation2 + $0x30] sm:$0xf0]  ;;  %v1502_v14 = vld [vmem:[#allocation2 + $0x124] sm:$0xf]  ;;  %v1052_v17 = vld [vmem:[#allocation2] sm:$0xf]  ;;  %v1197_v20 = vor.u32 %v1504_v11, %v1196_v9 }
  0x21   :  { %477 = vmatpush.bf16.msra.mxu0 %v1101_v56  ;;  %v1198_v15 = vld [vmem:[#allocation2 + $0x130] sm:$0xf0]  ;;  %v1468_v18 = vld [vmem:[#allocation2 + $0xc] sm:$0xf0]  ;;  %v1180_v19 = vld [vmem:[#allocation2 + $0x100] sm:$0xf]  ;;  %v1073_v21 = vor.u32 %v1470_v12, %v1070_v13 }
  0x22   :  { %491 = vmatpush.bf16.msra.mxu1 %v1229_v57  ;;  %v1500_v22 = vld [vmem:[#allocation2 + $0x10c] sm:$0xf0]  ;;  %v1466_v23 = vld [vmem:[#allocation2 + $0x4] sm:$0xf]  ;;  %v1054_v24 = vld [vmem:[#allocation2 + $0x10] sm:$0xf0]  ;;  %v1201_v25 = vor.u32 %v1502_v14, %v1198_v15  ;;  %v1053_v32 = vor.u32 %v1468_v18, %v1052_v17 }
  0x23   :  { %505 = vmatpush.bf16.msra.mxu2 %v1105_v58  ;;  %v1498_v26 = vld [vmem:[#allocation2 + $0x104] sm:$0xf]  ;;  %v1182_v27 = vld [vmem:[#allocation2 + $0x110] sm:$0xf0]  ;;  %v1172_v28 = vld [vmem:[#allocation2 + $0xe8] sm:$0xf]  ;;  %v1181_v36 = vor.u32 %v1500_v22, %v1180_v19  ;;  %v1057_v37 = vor.u32 %v1466_v23, %v1054_v24 }
  0x24   :  { %519 = vmatpush.bf16.msra.mxu3 %v1233_v62  ;;  %v1497_v29 = vld [vmem:[#allocation2 + $0xf4] sm:$0xf0]  ;;  %v1300_v30 = vld [vmem:[#allocation2 + $0x1e8] sm:$0xf]  ;;  %v1495_v33 = vld [vmem:[#allocation2 + $0xec] sm:$0xf]  ;;  %v1185_v41 = vor.u32 %v1498_v26, %v1182_v27 }
  0x25   :  { %478 = vmatpush.bf16.msra.mxu0 %v1085_v4  ;;  %v1529_v31 = vld [vmem:[#allocation2 + $0x1f4] sm:$0xf0]  ;;  %v1174_v34 = vld [vmem:[#allocation2 + $0xf8] sm:$0xf0]  ;;  %v1527_v35 = vld [vmem:[#allocation2 + $0x1ec] sm:$0xf]  ;;  %v1173_v42 = vor.u32 %v1497_v29, %v1172_v28 }
  0x26   :  { %492 = vmatpush.bf16.msra.mxu1 %v1213_v5  ;;  %v1302_v38 = vld [vmem:[#allocation2 + $0x1f8] sm:$0xf0]  ;;  %v73_v39 = vld [vmem:[%s1764_s0] sm:$0xff]  ;;  %v75_v40 = vld [vmem:[%s1764_s0 + $0x10] sm:$0xff]  ;;  %v1301_v45 = vor.u32 %v1529_v31, %v1300_v30  ;;  %v1177_v46 = vor.u32 %v1495_v33, %v1174_v34 }
  0x27   :  { %506 = vmatpush.bf16.msra.mxu2 %v1089_v6  ;;  %v74_v43 = vld [vmem:[%s1764_s0 + $0x8] sm:$0xff]  ;;  %v76_v44 = vld [vmem:[%s1764_s0 + $0x18] sm:$0xff]  ;;  %v1305_v50 = vor.u32 %v1527_v35, %v1302_v38  ;;  %v1731_v51 = vpack.c.bf16 %v75_v40, %v73_v39 }
  0x28   :  { %520 = vmatpush.bf16.msra.mxu3 %v1217_v10  ;;  %v1156_v47 = vld [vmem:[#allocation2 + $0xc8] sm:$0xf]  ;;  %v1493_v48 = vld [vmem:[#allocation2 + $0xd4] sm:$0xf0]  ;;  %v1491_v53 = vld [vmem:[#allocation2 + $0xcc] sm:$0xf]  ;;  %v1733_v55 = vpack.c.bf16 %v76_v44, %v74_v43 }
  0x29   :  { %479 = vmatpush.bf16.msra.mxu0 %v1069_v16  ;;  %v1284_v49 = vld [vmem:[#allocation2 + $0x1c8] sm:$0xf]  ;;  %v1525_v52 = vld [vmem:[#allocation2 + $0x1d4] sm:$0xf0]  ;;  %v1158_v54 = vld [vmem:[#allocation2 + $0xd8] sm:$0xf0]  ;;  %v1157_v58 = vor.u32 %v1493_v48, %v1156_v47 }
  0x2a   :  { %493 = vmatpush.bf16.msra.mxu1 %v1197_v20  ;;  %v1523_v56 = vld [vmem:[#allocation2 + $0x1cc] sm:$0xf]  ;;  %v1286_v57 = vld [vmem:[#allocation2 + $0x1d8] sm:$0xf0]  ;;  %v1285_v59 = vor.u32 %v1525_v52, %v1284_v49  ;;  %v1161_v60 = vor.u32 %v1491_v53, %v1158_v54  ;;  %v1140_v61 = vld [vmem:[#allocation2 + $0xa8] sm:$0xf] }
  0x2b   :  { %507 = vmatpush.bf16.msra.mxu2 %v1073_v21  ;;  %v1489_v62 = vld [vmem:[#allocation2 + $0xb4] sm:$0xf0]  ;;  %v1268_v63 = vld [vmem:[#allocation2 + $0x1a8] sm:$0xf]  ;;  %v1289_v0 = vor.u32 %v1523_v56, %v1286_v57  ;;  %v1487_v2 = vld [vmem:[#allocation2 + $0xac] sm:$0xf] }
  0x2c   :  { %521 = vmatpush.bf16.msra.mxu3 %v1201_v25  ;;  %v1521_v1 = vld [vmem:[#allocation2 + $0x1b4] sm:$0xf0]  ;;  %v1142_v3 = vld [vmem:[#allocation2 + $0xb8] sm:$0xf0]  ;;  %v1519_v4 = vld [vmem:[#allocation2 + $0x1ac] sm:$0xf]  ;;  %v1141_v6 = vor.u32 %v1489_v62, %v1140_v61 }
  0x2d   :  { %480 = vmatpush.bf16.msra.mxu0 %v1053_v32  ;;  %v1270_v5 = vld [vmem:[#allocation2 + $0x1b8] sm:$0xf0]  ;;  %v1269_v7 = vor.u32 %v1521_v1, %v1268_v63  ;;  %v1145_v8 = vor.u32 %v1487_v2, %v1142_v3  ;;  %v1124_v9 = vld [vmem:[#allocation2 + $0x88] sm:$0xf]  ;;  %v1485_v10 = vld [vmem:[#allocation2 + $0x94] sm:$0xf0] }
  0x2e   :  { %494 = vmatpush.bf16.msra.mxu1 %v1181_v36  ;;  %v1252_v11 = vld [vmem:[#allocation2 + $0x188] sm:$0xf]  ;;  %v1273_v12 = vor.u32 %v1519_v4, %v1270_v5  ;;  %v1517_v13 = vld [vmem:[#allocation2 + $0x194] sm:$0xf0]  ;;  %v1483_v14 = vld [vmem:[#allocation2 + $0x8c] sm:$0xf]  ;;  %v1125_v18 = vor.u32 %v1485_v10, %v1124_v9 }
  0x2f   :  { %508 = vmatpush.bf16.msra.mxu2 %v1057_v37  ;;  %v1126_v15 = vld [vmem:[#allocation2 + $0x98] sm:$0xf0]  ;;  %v1515_v16 = vld [vmem:[#allocation2 + $0x18c] sm:$0xf]  ;;  %v1253_v19 = vor.u32 %v1517_v13, %v1252_v11  ;;  %v1108_v21 = vld [vmem:[#allocation2 + $0x68] sm:$0xf] }
  0x30   :  { %522 = vmatpush.bf16.msra.mxu3 %v1185_v41  ;;  %481 = vmatmul.bf16.vlgmr.msra.gmra.mxu0 %v1731_v51  ;;  %v1254_v17 = vld [vmem:[#allocation2 + $0x198] sm:$0xf0]  ;;  %v1129_v20 = vor.u32 %v1483_v14, %v1126_v15  ;;  %v1481_v22 = vld [vmem:[#allocation2 + $0x74] sm:$0xf0]  ;;  %v1236_v23 = vld [vmem:[#allocation2 + $0x168] sm:$0xf] }
  0x31   :  { %529 = vmatpush.bf16.msrb.mxu0 %v1173_v42  ;;  %495 = vmatmul.bf16.vlgmr.msra.gmra.mxu1 %v1733_v55  ;;  %v1257_v24 = vor.u32 %v1515_v16, %v1254_v17  ;;  %v1513_v25 = vld [vmem:[#allocation2 + $0x174] sm:$0xf0]  ;;  %v1479_v26 = vld [vmem:[#allocation2 + $0x6c] sm:$0xf]  ;;  %v1110_v27 = vld [vmem:[#allocation2 + $0x78] sm:$0xf0]  ;;  %v1109_v30 = vor.u32 %v1481_v22, %v1108_v21 }
  0x32   :  { %543 = vmatpush.bf16.msrb.mxu1 %v1301_v45  ;;  %509 = vmatmul.bf16.vlgmr.msra.gmra.mxu2 %v1731_v51  ;;  %v1511_v28 = vld [vmem:[#allocation2 + $0x16c] sm:$0xf]  ;;  %v1238_v29 = vld [vmem:[#allocation2 + $0x178] sm:$0xf0]  ;;  %v1092_v31 = vld [vmem:[#allocation2 + $0x48] sm:$0xf]  ;;  %v1237_v33 = vor.u32 %v1513_v25, %v1236_v23  ;;  %v1113_v34 = vor.u32 %v1479_v26, %v1110_v27 }
  0x33   :  { %557 = vmatpush.bf16.msrb.mxu2 %v1177_v46  ;;  %523 = vmatmul.bf16.vlgmr.msra.gmra.mxu3 %v1733_v55  ;;  %v1477_v32 = vld [vmem:[#allocation2 + $0x54] sm:$0xf0]  ;;  %v1220_v35 = vld [vmem:[#allocation2 + $0x148] sm:$0xf]  ;;  %v1241_v37 = vor.u32 %v1511_v28, %v1238_v29  ;;  %v1475_v38 = vld [vmem:[#allocation2 + $0x4c] sm:$0xf] }
  0x34   :  { %571 = vmatpush.bf16.msrb.mxu3 %v1305_v50  ;;  %v1509_v36 = vld [vmem:[#allocation2 + $0x154] sm:$0xf0]  ;;  %v1094_v39 = vld [vmem:[#allocation2 + $0x58] sm:$0xf0]  ;;  %v1507_v40 = vld [vmem:[#allocation2 + $0x14c] sm:$0xf]  ;;  %v1093_v42 = vor.u32 %v1477_v32, %v1092_v31 }
  0x35   :  { %530 = vmatpush.bf16.msrb.mxu0 %v1157_v58  ;;  %v1222_v41 = vld [vmem:[#allocation2 + $0x158] sm:$0xf0]  ;;  %v1221_v43 = vor.u32 %v1509_v36, %v1220_v35  ;;  %v1097_v44 = vor.u32 %v1475_v38, %v1094_v39  ;;  %v1076_v45 = vld [vmem:[#allocation2 + $0x28] sm:$0xf]  ;;  %v1473_v46 = vld [vmem:[#allocation2 + $0x34] sm:$0xf0] }
  0x36   :  { %544 = vmatpush.bf16.msrb.mxu1 %v1285_v59  ;;  %v1204_v47 = vld [vmem:[#allocation2 + $0x128] sm:$0xf]  ;;  %v1225_v48 = vor.u32 %v1507_v40, %v1222_v41  ;;  %v1505_v49 = vld [vmem:[#allocation2 + $0x134] sm:$0xf0]  ;;  %v1471_v50 = vld [vmem:[#allocation2 + $0x2c] sm:$0xf]  ;;  %v1077_v56 = vor.u32 %v1473_v46, %v1076_v45 }
  0x37   :  { %558 = vmatpush.bf16.msrb.mxu2 %v1161_v60  ;;  %v1078_v52 = vld [vmem:[#allocation2 + $0x38] sm:$0xf0]  ;;  %v1503_v53 = vld [vmem:[#allocation2 + $0x12c] sm:$0xf]  ;;  %v1205_v57 = vor.u32 %v1505_v49, %v1204_v47  ;;  %v1060_v59 = vld [vmem:[#allocation2 + $0x8] sm:$0xf] }
  0x38   :  { %572 = vmatpush.bf16.msrb.mxu3 %v1289_v0  ;;  %v1206_v54 = vld [vmem:[#allocation2 + $0x138] sm:$0xf0]  ;;  %v1081_v58 = vor.u32 %v1471_v50, %v1078_v52  ;;  %v1469_v60 = vld [vmem:[#allocation2 + $0x14] sm:$0xf0]  ;;  %v1188_v61 = vld [vmem:[#allocation2 + $0x108] sm:$0xf] }
  0x39   :  { %531 = vmatpush.bf16.msrb.mxu0 %v1141_v6  ;;  %v1209_v62 = vor.u32 %v1503_v53, %v1206_v54  ;;  %v1501_v63 = vld [vmem:[#allocation2 + $0x114] sm:$0xf0]  ;;  %v1467_v0 = vld [vmem:[#allocation2 + $0xc] sm:$0xf]  ;;  %v1062_v1 = vld [vmem:[#allocation2 + $0x18] sm:$0xf0]  ;;  %v1061_v4 = vor.u32 %v1469_v60, %v1060_v59 }
  0x3a   :  { %545 = vmatpush.bf16.msrb.mxu1 %v1269_v7  ;;  %v1499_v2 = vld [vmem:[#allocation2 + $0x10c] sm:$0xf]  ;;  %v1190_v3 = vld [vmem:[#allocation2 + $0x118] sm:$0xf0]  ;;  %v1189_v5 = vor.u32 %v1501_v63, %v1188_v61  ;;  %v1065_v6 = vor.u32 %v1467_v0, %v1062_v1  ;;  %v1536_v10 = vld [vmem:[#allocation4 + $0x30] sm:$0xff] }
  0x3b   :  { %559 = vmatpush.bf16.msrb.mxu2 %v1145_v8  ;;  %v1193_v7 = vor.u32 %v1499_v2, %v1190_v3  ;;  %v1537_v8 = vld [vmem:[#allocation4 + $0x38] sm:$0xff]  ;;  %v1544_v11 = vld [vmem:[#allocation4 + $0x70] sm:$0xff]  ;;  %v1543_v13 = vld [vmem:[#allocation4 + $0x68] sm:$0xff] }
  0x3c   :  { %573 = vmatpush.bf16.msrb.mxu3 %v1273_v12  ;;  %v1545_v9 = vld [vmem:[#allocation4 + $0x78] sm:$0xff]  ;;  %v1535_v12 = vld [vmem:[#allocation4 + $0x28] sm:$0xff]  ;;  %v1534_v14 = vld [vmem:[#allocation4 + $0x20] sm:$0xff] }
  0x3d   :  { %532 = vmatpush.bf16.msrb.mxu0 %v1125_v18  ;;  %v1533_v15 = vld [vmem:[#allocation4 + $0x18] sm:$0xff]  ;;  %v1542_v16 = vld [vmem:[#allocation4 + $0x60] sm:$0xff]  ;;  %v1532_v17 = vld [vmem:[#allocation4 + $0x10] sm:$0xff] }
  0x3e   :  { %546 = vmatpush.bf16.msrb.mxu1 %v1253_v19  ;;  %v1541_v18 = vld [vmem:[#allocation4 + $0x58] sm:$0xff]  ;;  %v1531_v19 = vld [vmem:[#allocation4 + $0x8] sm:$0xff]  ;;  %v1552_v22 = vld [vmem:[#allocation4 + $0xb0] sm:$0xff] }
  0x3f   :  { %560 = vmatpush.bf16.msrb.mxu2 %v1129_v20  ;;  %v1553_v20 = vld [vmem:[#allocation4 + $0xb8] sm:$0xff]  ;;  %v1539_v21 = vld [vmem:[#allocation4 + $0x48] sm:$0xff]  ;;  %v1538_v23 = vld [vmem:[#allocation4 + $0x40] sm:$0xff] }
  0x40   :  { %574 = vmatpush.bf16.msrb.mxu3 %v1257_v24  ;;  %v1561_v24 = vld [vmem:[#allocation4 + $0xf8] sm:$0xff]  ;;  %v1551_v25 = vld [vmem:[#allocation4 + $0xa8] sm:$0xff]  ;;  %v1560_v26 = vld [vmem:[#allocation4 + $0xf0] sm:$0xff] }
  0x41   :  { %533 = vmatpush.bf16.msrb.mxu0 %v1109_v30  ;;  %v1550_v27 = vld [vmem:[#allocation4 + $0xa0] sm:$0xff]  ;;  %v1559_v29 = vld [vmem:[#allocation4 + $0xe8] sm:$0xff]  ;;  %v1549_v30 = vld [vmem:[#allocation4 + $0x98] sm:$0xff] }
  0x42   :  { %547 = vmatpush.bf16.msrb.mxu1 %v1237_v33  ;;  %v1746_v28 = vld [vmem:[%s1766_s2] sm:$0xf]  ;;  %v1548_v35 = vld [vmem:[#allocation4 + $0x90] sm:$0xff]  ;;  %v1557_v38 = vld [vmem:[#allocation4 + $0xd8] sm:$0xff] }
  0x43   :  { %561 = vmatpush.bf16.msrb.mxu2 %v1113_v34  ;;  %v145_v31 = vperm.slane %v1746_v28, 0  ;;  %v1558_v33 = vld [vmem:[#allocation4 + $0xe0] sm:$0xff]  ;;  %v1547_v41 = vld [vmem:[#allocation4 + $0x88] sm:$0xff]  ;;  %v1556_v45 = vld [vmem:[#allocation4 + $0xd0] sm:$0xff]  ;;  %v147_v2 = vperm.slane %v1746_v28, 2 }
  0x44   :  { %575 = vmatpush.bf16.msrb.mxu3 %v1241_v37  ;;  %v146_v37 = vperm.slane %v1746_v28, 1  ;;  %v1555_v53 = vld [vmem:[#allocation4 + $0xc8] sm:$0xff] }
  0x45   :  { %534 = vmatpush.bf16.msrb.mxu0 %v1093_v42 }
  0x46   :  { %548 = vmatpush.bf16.msrb.mxu1 %v1221_v43 }
  0x47   :  { %562 = vmatpush.bf16.msrb.mxu2 %v1097_v44 }
  0x48   :  { %576 = vmatpush.bf16.msrb.mxu3 %v1225_v48  ;;  %v1546_v48 = vld [vmem:[#allocation4 + $0x80] sm:$0xff] }
  0x49   :  { %535 = vmatpush.bf16.msrb.mxu0 %v1077_v56 }
  0x4a   :  { %549 = vmatpush.bf16.msrb.mxu1 %v1205_v57 }
  0x4b   :  { %563 = vmatpush.bf16.msrb.mxu2 %v1081_v58 }
  0x4c   :  { %577 = vmatpush.bf16.msrb.mxu3 %v1209_v62  ;;  %v1554_v62 = vld [vmem:[#allocation4 + $0xc0] sm:$0xff] }
  0x4d   :  { %536 = vmatpush.bf16.msrb.mxu0 %v1061_v4 }
  0x4e   :  { %550 = vmatpush.bf16.msrb.mxu1 %v1189_v5 }
  0x4f   :  { %564 = vmatpush.bf16.msrb.mxu2 %v1065_v6  ;;  %v148_v6 = vperm.slane %v1746_v28, 3  ;;  %v1564_v28 = vld [vmem:[#allocation6 + $0x10] sm:$0xff] }
  0x50   :  { %578 = vmatpush.bf16.msrb.mxu3 %v1193_v7  ;;  %537 = vmatmul.bf16.vlgmr.msrb.gmra.mxu0 %v1731_v51 }
  0x51   :  { %857 = vmatpush.bf16.msra.mxu0 %v1537_v8  ;;  %551 = vmatmul.bf16.vlgmr.msrb.gmra.mxu1 %v1733_v55 }
  0x52   :  { %871 = vmatpush.bf16.msra.mxu1 %v1545_v9  ;;  %565 = vmatmul.bf16.vlgmr.msrb.gmra.mxu2 %v1731_v51  ;;  %v1540_v51 = vld [vmem:[#allocation4 + $0x50] sm:$0xff] }
  0x53   :  { %579 = vmatmul.bf16.vlgmr.msrb.gmra.mxu3 %v1733_v55  ;;  %v1530_v55 = vld [vmem:[#allocation4] sm:$0xff]  ;;  %885 = vmatpush.bf16.msra.mxu2 %v1553_v20 }
  0x54   :  { %899 = vmatpush.bf16.msra.mxu3 %v1561_v24  ;;  %v1568_v24 = vld [vmem:[#allocation6 + $0x30] sm:$0xff] }
  0x55   :  { %858 = vmatpush.bf16.msra.mxu0 %v1536_v10 }
  0x56   :  { %872 = vmatpush.bf16.msra.mxu1 %v1544_v11 }
  0x57   :  { %886 = vmatpush.bf16.msra.mxu2 %v1552_v22 }
  0x58   :  { %900 = vmatpush.bf16.msra.mxu3 %v1560_v26  ;;  %v1566_v26 = vld [vmem:[#allocation6 + $0x20] sm:$0xff] }
  0x59   :  { %859 = vmatpush.bf16.msra.mxu0 %v1535_v12 }
  0x5a   :  { %873 = vmatpush.bf16.msra.mxu1 %v1543_v13 }
  0x5b   :  { %887 = vmatpush.bf16.msra.mxu2 %v1551_v25  ;;  %v1567_v25 = vld [vmem:[#allocation6 + $0x28] sm:$0xff] }
  0x5c   :  { %901 = vmatpush.bf16.msra.mxu3 %v1559_v29  ;;  %v1563_v29 = vld [vmem:[#allocation6 + $0x8] sm:$0xff] }
  0x5d   :  { %860 = vmatpush.bf16.msra.mxu0 %v1534_v14 }
  0x5e   :  { %874 = vmatpush.bf16.msra.mxu1 %v1542_v16 }
  0x5f   :  { %888 = vmatpush.bf16.msra.mxu2 %v1550_v27  ;;  %v1565_v27 = vld [vmem:[#allocation6 + $0x18] sm:$0xff] }
  0x60   :  { %902 = vmatpush.bf16.msra.mxu3 %v1558_v33 }
  0x61   :  { %861 = vmatpush.bf16.msra.mxu0 %v1533_v15 }
  0x62   :  { %875 = vmatpush.bf16.msra.mxu1 %v1541_v18 }
  0x63   :  { %889 = vmatpush.bf16.msra.mxu2 %v1549_v30  ;;  %v1562_v30 = vld [vmem:[#allocation6] sm:$0xff] }
  0x64   :  { %903 = vmatpush.bf16.msra.mxu3 %v1557_v38 }
  0x65   :  { %862 = vmatpush.bf16.msra.mxu0 %v1532_v17 }
  0x66   :  { %876 = vmatpush.bf16.msra.mxu1 %v1540_v51 }
  0x67   :  { %890 = vmatpush.bf16.msra.mxu2 %v1548_v35 }
  0x68   :  { %904 = vmatpush.bf16.msra.mxu3 %v1556_v45 }
  0x69   :  { %863 = vmatpush.bf16.msra.mxu0 %v1531_v19 }
  0x6a   :  { %877 = vmatpush.bf16.msra.mxu1 %v1539_v21 }
  0x6b   :  { %891 = vmatpush.bf16.msra.mxu2 %v1547_v41 }
  0x6c   :  { %905 = vmatpush.bf16.msra.mxu3 %v1555_v53 }
  0x6d   :  { %864 = vmatpush.bf16.msra.mxu0 %v1530_v55 }
  0x6e   :  { %878 = vmatpush.bf16.msra.mxu1 %v1538_v23  ;;  %v1569_v23 = vld [vmem:[#allocation6 + $0x38] sm:$0xff] }
  0x6f   :  { %892 = vmatpush.bf16.msra.mxu2 %v1546_v48 }
  0x70   :  { %906 = vmatpush.bf16.msra.mxu3 %v1554_v62 }
  0x71   :  { %984 = vmatpush.bf16.msrb.mxu0 %v1569_v23 }
  0x75   :  { %985 = vmatpush.bf16.msrb.mxu0 %v1568_v24 }
  0x79   :  { %986 = vmatpush.bf16.msrb.mxu0 %v1567_v25 }
  0x7d   :  { %987 = vmatpush.bf16.msrb.mxu0 %v1566_v26 }
  0x81   :  { %988 = vmatpush.bf16.msrb.mxu0 %v1565_v27 }
  0x85   :  { %989 = vmatpush.bf16.msrb.mxu0 %v1564_v28 }
  0x89   :  { %990 = vmatpush.bf16.msrb.mxu0 %v1563_v29 }
  0x8d   :  { %991 = vmatpush.bf16.msrb.mxu0 %v1562_v30 }
  0xad   :  { %v482_v32 = vpop.f32.mrf.mxu0 }
  0xae   :  { %v496_v34 = vpop.f32.mrf.mxu1  ;;  %v483_v36 = vadd.f32 %v482_v32, %v145_v31 }
  0xb0   :  { %v497_v42 = vadd.f32 %v496_v34, %v483_v36  ;;  %v1577_v34 = vld [vmem:[%s1768_s4] ss:$0 sm:$0xff] }
  0xb2   :  { %v585_v49 = vmax.f32 %v497_v42, 0.0 }
  0xb5   :  { %v510_v39 = vpop.f32.mrf.mxu2  ;;  %v484_v44 = vpop.f32.mrf.mxu0 }
  0xb6   :  { %v524_v40 = vpop.f32.mrf.mxu3  ;;  %v511_v43 = vadd.f32 %v510_v39, %v146_v37  ;;  %v485_v46 = vadd.f32 %v484_v44, %v145_v31  ;;  %v498_v47 = vpop.f32.mrf.mxu1 }
  0xb8   :  { %v499_v50 = vadd.f32 %v498_v47, %v485_v46  ;;  %v525_v52 = vadd.f32 %v524_v40, %v511_v43 }
  0xba   :  { %v589_v54 = vmax.f32 %v499_v50, 0.0  ;;  %v586_v60 = vmax.f32 %v525_v52, 0.0  ;;  %v1578_v52 = vld [vmem:[%s1770_s6] ss:$0 sm:$0xff] }
  0xbc   :  { %v593_v59 = vpack.c.bf16 %v589_v54, %v585_v49 }
  0xbd   :  { %v512_v56 = vpop.f32.mrf.mxu2 }
  0xbe   :  { %v513_v57 = vadd.f32 %v512_v56, %v146_v37  ;;  %v526_v58 = vpop.f32.mrf.mxu3  ;;  %865 = vmatmul.bf16.vlgmr.msra.gmra.mxu0 %v593_v59 }
  0xc0   :  { %v527_v61 = vadd.f32 %v526_v58, %v513_v57 }
  0xc2   :  { %v590_v63 = vmax.f32 %v527_v61, 0.0 }
  0xc4   :  { %v594_v0 = vpack.c.bf16 %v590_v63, %v586_v60 }
  0xc6   :  { %879 = vmatmul.bf16.vlgmr.msra.gmra.mxu1 %v594_v0 }
  0xcd   :  { %v538_v1 = vpop.f32.mrf.mxu0 }
  0xce   :  { %v552_v3 = vpop.f32.mrf.mxu1  ;;  %v539_v4 = vadd.f32 %v538_v1, %v147_v2 }
  0xd0   :  { %v553_v9 = vadd.f32 %v552_v3, %v539_v4 }
  0xd2   :  { %v587_v14 = vmax.f32 %v553_v9, 0.0 }
  0xd5   :  { %v566_v5 = vpop.f32.mrf.mxu2  ;;  %v540_v8 = vpop.f32.mrf.mxu0 }
  0xd6   :  { %v580_v7 = vpop.f32.mrf.mxu3  ;;  %v541_v10 = vadd.f32 %v540_v8, %v147_v2  ;;  %v554_v11 = vpop.f32.mrf.mxu1  ;;  %v567_v13 = vadd.f32 %v566_v5, %v148_v6 }
  0xd8   :  { %v555_v12 = vadd.f32 %v554_v11, %v541_v10  ;;  %v581_v18 = vadd.f32 %v580_v7, %v567_v13 }
  0xda   :  { %v591_v15 = vmax.f32 %v555_v12, 0.0  ;;  %v588_v20 = vmax.f32 %v581_v18, 0.0 }
  0xdc   :  { %v595_v16 = vpack.c.bf16 %v591_v15, %v587_v14 }
  0xdd   :  { %v568_v17 = vpop.f32.mrf.mxu2 }
  0xde   :  { %v569_v19 = vadd.f32 %v568_v17, %v148_v6  ;;  %v582_v51 = vpop.f32.mrf.mxu3  ;;  %893 = vmatmul.bf16.vlgmr.msra.gmra.mxu2 %v595_v16 }
  0xe0   :  { %v583_v55 = vadd.f32 %v582_v51, %v569_v19 }
  0xe2   :  { %v592_v21 = vmax.f32 %v583_v55, 0.0 }
  0xe4   :  { %v596_v22 = vpack.c.bf16 %v592_v21, %v588_v20 }
  0xe6   :  { %907 = vmatmul.bf16.vlgmr.msra.gmra.mxu3 %v596_v22 }
 0x13b   :  { %v866_v31 = vpop.f32.mrf.mxu0 }
 0x13c   :  { %v867_v35 = vadd.f32 %v1577_v34, %v866_v31 }
 0x143   :  { %v880_v32 = vpop.f32.mrf.mxu1  ;;  %v868_v36 = vpop.f32.mrf.mxu0 }
 0x144   :  { %v881_v39 = vadd.f32 %v880_v32, %v867_v35  ;;  %v869_v40 = vadd.f32 %v1577_v34, %v868_v36 }
 0x14b   :  { %v882_v38 = vpop.f32.mrf.mxu1 }
 0x14c   :  { %v883_v42 = vadd.f32 %v882_v38, %v869_v40 }
 0x161   :  { %v894_v33 = vpop.f32.mrf.mxu2 }
 0x162   :  { %v895_v43 = vadd.f32 %v894_v33, %v881_v39 }
 0x169   :  { %v908_v37 = vpop.f32.mrf.mxu3  ;;  %v896_v41 = vpop.f32.mrf.mxu2 }
 0x16a   :  { %v909_v44 = vadd.f32 %v908_v37, %v895_v43  ;;  %v897_v45 = vadd.f32 %v896_v41, %v883_v42 }
 0x16c   :  { %v913_v48 = vmax.f32 %v909_v44, 0.0 }
 0x171   :  { %v910_v46 = vpop.f32.mrf.mxu3 }
 0x172   :  { %v911_v47 = vadd.f32 %v910_v46, %v897_v45 }
 0x174   :  { %v914_v49 = vmax.f32 %v911_v47, 0.0 }
 0x176   :  { %v915_v50 = vpack.c.bf16 %v914_v49, %v913_v48 }
 0x178   :  { %992 = vmatmul.bf16.vlgmr.msrb.gmra.mxu0 %v915_v50 }
 0x1f5   :  { %v993_v53 = vpop.f32.mrf.mxu0 }
 0x1f6   :  { %v994_v54 = vadd.f32 %v1578_v52, %v993_v53 }
 0x1f8   :  { %998 = vmax.xlane.f32.xlu0 %v994_v54 }
 0x1fd   :  { %v995_v56 = vpop.f32.mrf.mxu0 }
 0x1fe   :  { %v996_v57 = vadd.f32 %v1578_v52, %v995_v56 }
 0x200   :  { %1000 = vmax.xlane.f32.xlu0 %v996_v57 }
 0x26b   :  { %v999_v58 = vpop.xlane.xlu0 %998 }
 0x26c   :  { %v1002_v59 = vsub.f32 %v994_v54, %v999_v58 }
 0x26e   :  { %v1004_v60 = vmul.f32 1.442695, %v1002_v59 }
 0x270   :  { %1579 = vpow2.f32 %v1004_v60 }
 0x273   :  { %v1001_v61 = vpop.xlane.xlu0 %1000 }
 0x274   :  { %v1003_v62 = vsub.f32 %v996_v57, %v1001_v61 }
 0x276   :  { %v1580_v63 = vpop.eup %1579  ;;  %v1006_v0 = vmul.f32 1.442695, %v1003_v62 }
 0x277   :  { %1008 = vadd.xlane.f32.xlu1 %v1580_v63 }
 0x278   :  { %1581 = vpow2.f32 %v1006_v0 }
 0x27e   :  { %v1582_v1 = vpop.eup %1581 }
 0x27f   :  { %1010 = vadd.xlane.f32.xlu1 %v1582_v1 }
 0x2ea   :  { %v1009_v2 = vpop.xlane.xlu1 %1008 }
 0x2eb   :  { %1583 = vrcp.f32 %v1009_v2  ;;  %v1023_v7 = vand.u32 2147483648, %v1009_v2  ;;  %v1021_v9 = vand.u32 2147483647, %v1009_v2  ;;  %vm1017_vm1 = vweird.f32 %v1009_v2 }
 0x2ed   :  { %v1024_v12 = vor.u32 1.1754944e-38, %v1023_v7  ;;  %vm1022_vm3 = vcmp.eq.f32.partialorder %v1021_v9, 8.507059e+37 }
 0x2f1   :  { %v1584_v3 = vpop.eup %1583 }
 0x2f2   :  { %v1013_v4 = vmul.f32 %v1584_v3, %v1009_v2  ;;  %v1011_v5 = vpop.xlane.xlu1 %1010  ;;  %vm1018_vm0 = vweird.f32 %v1584_v3 }
 0x2f3   :  { %1585 = vrcp.f32 %v1011_v5  ;;  %vm1019_vm2 = vmor %vm1017_vm1, %vm1018_vm0  ;;  %v1038_v18 = vand.u32 2147483648, %v1011_v5  ;;  %v1036_v51 = vand.u32 2147483647, %v1011_v5  ;;  %vm1032_vm5 = vweird.f32 %v1011_v5 }
 0x2f4   :  { %v1014_v6 = vsub.f32 1.0, %v1013_v4 }
 0x2f5   :  { %v1039_v20 = vor.u32 1.1754944e-38, %v1038_v18  ;;  %vm1037_vm7 = vcmp.eq.f32.partialorder %v1036_v51, 8.507059e+37 }
 0x2f6   :  { %v1015_v8 = vmul.f32 %v1584_v3, %v1014_v6 }
 0x2f8   :  { %v1016_v10 = vadd.f32 %v1584_v3, %v1015_v8 }
 0x2f9   :  { %v1586_v11 = vpop.eup %1585 }
 0x2fa   :  { %v1020_v13 = vsel %vm1019_vm2, %v1584_v3, %v1016_v10  ;;  %v1028_v14 = vmul.f32 %v1586_v11, %v1011_v5  ;;  %vm1033_vm4 = vweird.f32 %v1586_v11 }
 0x2fb   :  { %v1025_v15 = vsel %vm1022_vm3, %v1024_v12, %v1020_v13  ;;  %vm1034_vm6 = vmor %vm1032_vm5, %vm1033_vm4 }
 0x2fc   :  { %v1026_v16 = vmul.f32 %v1580_v63, %v1025_v15  ;;  %v1029_v17 = vsub.f32 1.0, %v1028_v14 }
 0x2fe   :  { %1042 = vst [vmem:[%s1771_s7] sm:$0xff] %v1026_v16  ;;  %v1030_v19 = vmul.f32 %v1586_v11, %v1029_v17 }
 0x300   :  { %v1031_v55 = vadd.f32 %v1586_v11, %v1030_v19 }
 0x302   :  { %v1035_v21 = vsel %vm1034_vm6, %v1586_v11, %v1031_v55 }
 0x303   :  { %v1040_v22 = vsel %vm1037_vm7, %v1039_v20, %v1035_v21 }
 0x304   :  { %v1041_v23 = vmul.f32 %v1582_v1, %v1040_v22 }
 0x306   :  { %1043 = vst [vmem:[%s1771_s7 + $0x8] sm:$0xff] %v1041_v23 }
 0x307   :  { %1048 = vsyncpa [#allocation3], 1 }
 0x308   :  { %1049 = vsyncpa [#allocation5], 1 }

</bundles_post_ra>
